<compile_context>
chip_gen: v7x
topology: tpu7x:2x2x1
jax: 0.10.0
libtpu: 0.0.40
codegen_flags: <defaults>
</compile_context>

<pallas_src>
import jax
import jax.numpy as jnp
from jax.experimental import pallas as pl
from jax.experimental.pallas import tpu as pltpu


def _round_up(x, m):
    return ((x + m - 1) // m) * m


# ---------------------------------------------------------------------------
# Kernels
# ---------------------------------------------------------------------------
def _bmm_kernel_single_k(x1_ref, x2_ref, o_ref):
    # Whole K in one tile: a single MXU matmul and a lane-dense store.
    # x1_ref: (1, tm, K), x2_ref: (1, K, tn), o_ref: (1, tm, tn)
    o_ref[0] = jnp.dot(
        x1_ref[0], x2_ref[0], preferred_element_type=jnp.float32
    ).astype(o_ref.dtype)


def _bmm_kernel_multi_k_f32(x1_ref, x2_ref, o_ref):
    # K split across the innermost grid axis; the output block index is
    # constant along K so the f32 output block stays resident in VMEM and we
    # accumulate directly into it (no scratch, no zero-fill pass).
    partial = jnp.dot(x1_ref[0], x2_ref[0], preferred_element_type=jnp.float32)

    @pl.when(pl.program_id(3) == 0)
    def _first():
        o_ref[0] = partial

    @pl.when(pl.program_id(3) != 0)
    def _rest():
        o_ref[0] += partial


def _bmm_kernel_multi_k_acc(x1_ref, x2_ref, o_ref, acc_ref):
    # Fallback for non-f32 outputs: carry an f32 VMEM accumulator over K.
    @pl.when(pl.program_id(3) == 0)
    def _init():
        acc_ref[...] = jnp.zeros_like(acc_ref)

    acc_ref[...] += jnp.dot(
        x1_ref[0], x2_ref[0], preferred_element_type=jnp.float32
    )

    @pl.when(pl.program_id(3) == pl.num_programs(3) - 1)
    def _fin():
        o_ref[0] = acc_ref[...].astype(o_ref.dtype)


# ---------------------------------------------------------------------------
# Wrapper
# ---------------------------------------------------------------------------
def _vmem_budget_and_caps():
    """Generation-aware scoped-VMEM budget and tile caps (tm, tn, tk)."""
    try:
        vmem = pltpu.get_tpu_info().vmem_capacity_bytes
    except Exception:  # pragma: no cover - conservative default
        vmem = 64 * 1024 * 1024
    if vmem >= 96 * 1024 * 1024:
        # v5e / v6e: 128 MiB physical VMEM -> big tiles, generous scoped cap.
        return 96 * 1024 * 1024, 512, 1024, 1024
    # v7x: 64 MiB per TensorCore -> smaller tiles, ~44 MiB scoped cap.
    return 44 * 1024 * 1024, 256, 512, 1024


def model_forward(x1, x2, *, tm_max=None, tn_max=None, tk_max=None):
    """Equivalent of Model.forward: matmul(x1, x2.permute(2, 1, 0))."""
    B1, M, K = x1.shape
    B2, K2, C = x2.shape
    # TODO(synk): only the reference module's broadcast case (x1 batch == 1)
    # is implemented; a full batched (B1 == C) variant is out of scope here.
    assert B1 == 1, "only the batch-broadcast case (x1 batch == 1) is supported"
    assert K == K2, "contraction dims must match"

    out_dtype = jnp.result_type(x1.dtype, x2.dtype)

    vmem_limit, tm_cap, tn_cap, tk_cap = _vmem_budget_and_caps()
    tm_cap = tm_max if tm_max is not None else tm_cap
    tn_cap = tn_max if tn_max is not None else tn_cap
    tk_cap = tk_max if tk_max is not None else tk_cap

    # M / C tiles: (8, 128)-aligned; Pallas handles partial edge blocks and
    # masks the HBM writeback, so no host-side padding of M or C is needed.
    tm = min(tm_cap, _round_up(M, 8))
    tn = min(tn_cap, _round_up(C, 128))

    # K: keep whole when it fits one tile ("full array dim" satisfies the
    # alignment rule); otherwise split and zero-pad K so padded values cannot
    # corrupt the contraction.
    if K <= tk_cap:
        tk = K
        k_tiles = 1
    else:
        tk = tk_cap
        k_pad = _round_up(K, tk)
        if k_pad != K:
            x1 = jnp.pad(x1, ((0, 0), (0, 0), (0, k_pad - K)))
            x2 = jnp.pad(x2, ((0, 0), (0, k_pad - K), (0, 0)))
        k_tiles = k_pad // tk

    m_tiles = pl.cdiv(M, tm)
    c_tiles = pl.cdiv(C, tn)

    if k_tiles == 1:
        # Grid (b, c_tile, m_tile): x2's block index (b, 0, j) is constant
        # along the inner m sweep, so the streamed RHS tile stays resident;
        # only the small shared LHS is re-fetched per m tile.
        out_slab = pl.pallas_call(
            _bmm_kernel_single_k,
            out_shape=jax.ShapeDtypeStruct((B2, M, C), out_dtype),
            grid_spec=pltpu.PrefetchScalarGridSpec(
                num_scalar_prefetch=0,
                grid=(B2, c_tiles, m_tiles),
                in_specs=[
                    pl.BlockSpec((1, tm, tk), lambda b, j, i: (0, i, 0)),
                    pl.BlockSpec((1, tk, tn), lambda b, j, i: (b, 0, j)),
                ],
                out_specs=pl.BlockSpec((1, tm, tn), lambda b, j, i: (b, i, j)),
            ),
            compiler_params=pltpu.CompilerParams(
                dimension_semantics=("parallel", "parallel", "parallel"),
                vmem_limit_bytes=vmem_limit,
            ),
        )(x1, x2)
    else:
        if out_dtype == jnp.float32:
            kernel = _bmm_kernel_multi_k_f32
            scratch = []
        else:
            kernel = _bmm_kernel_multi_k_acc
            scratch = [pltpu.VMEM((tm, tn), jnp.float32)]
        out_slab = pl.pallas_call(
            kernel,
            out_shape=jax.ShapeDtypeStruct((B2, M, C), out_dtype),
            grid_spec=pltpu.PrefetchScalarGridSpec(
                num_scalar_prefetch=0,
                grid=(B2, c_tiles, m_tiles, k_tiles),
                in_specs=[
                    pl.BlockSpec((1, tm, tk), lambda b, j, i, k: (0, i, k)),
                    pl.BlockSpec((1, tk, tn), lambda b, j, i, k: (b, k, j)),
                ],
                out_specs=pl.BlockSpec(
                    (1, tm, tn), lambda b, j, i, k: (b, i, j)
                ),
                scratch_shapes=scratch,
            ),
            compiler_params=pltpu.CompilerParams(
                dimension_semantics=(
                    "parallel", "parallel", "parallel", "arbitrary",
                ),
                vmem_limit_bytes=vmem_limit,
            ),
        )(x1, x2)

    # torch output layout (C, M, B2).
    # TODO(synk): skip / fuse this permute when the consumer accepts (B2, M, C);
    # keeping lane dim = C inside the kernel is the right layout either way.
    return jnp.transpose(out_slab, (2, 1, 0))


if __name__ == "__main__":
    key = jax.random.PRNGKey(0)
    k1, k2, k3, k4, k5, k6 = jax.random.split(key, 6)

    # Shapes matching the PyTorch test: x1, x2 = randn(1, 2, 2).
    x1 = jax.random.normal(k1, (1, 2, 2), dtype=jnp.float32)
    x2 = jax.random.normal(k2, (1, 2, 2), dtype=jnp.float32)
    out = model_forward(x1, x2)
    jax.block_until_ready(out)
    ref = jnp.matmul(
        x1, jnp.transpose(x2, (2, 1, 0)), precision=jax.lax.Precision.HIGHEST
    )
    assert out.shape == ref.shape == (2, 2, 1), out.shape
    assert jnp.allclose(out, ref, atol=1e-4, rtol=1e-4)

    # Larger single-K-tile case: partial M/C edge blocks, batched RHS.
    x1b = jax.random.normal(k3, (1, 48, 64), dtype=jnp.float32)
    x2b = jax.random.normal(k4, (2, 64, 40), dtype=jnp.float32)
    outb = model_forward(x1b, x2b)
    jax.block_until_ready(outb)
    refb = jnp.matmul(
        x1b, jnp.transpose(x2b, (2, 1, 0)), precision=jax.lax.Precision.HIGHEST
    )
    assert outb.shape == refb.shape == (40, 48, 2), outb.shape
    assert jnp.allclose(outb, refb, atol=1e-4, rtol=1e-4)

    # Multi-K-tile path (forced small tk): exercises K zero-padding and the
    # resident-output accumulation over the K grid axis.
    x1c = jax.random.normal(k5, (1, 16, 300), dtype=jnp.float32)
    x2c = jax.random.normal(k6, (3, 300, 24), dtype=jnp.float32)
    outc = model_forward(x1c, x2c, tk_max=128)
    jax.block_until_ready(outc)
    refc = jnp.matmul(
        x1c, jnp.transpose(x2c, (2, 1, 0)), precision=jax.lax.Precision.HIGHEST
    )
    assert outc.shape == refc.shape == (24, 16, 3), outc.shape
    assert jnp.allclose(outc, refc, atol=1e-3, rtol=1e-3)

    print("KERNEL_OK")
</pallas_src>

<mosaic_0001>
module attributes {stable_mosaic.version = 11 : i64} {
  func.func @_bmm_kernel_single_k(%arg0: i32, %arg1: i32, %arg2: i32, %arg3: memref<1x8x2xf32, #tpu.memory_space<vmem>>, %arg4: memref<1x2x128xf32, #tpu.memory_space<vmem>>, %arg5: memref<1x8x128xf32, #tpu.memory_space<vmem>>) attributes {dimension_semantics = [#tpu.dimension_semantics<parallel>, #tpu.dimension_semantics<parallel>, #tpu.dimension_semantics<parallel>], iteration_bounds = array<i64: 1, 1, 1>, scalar_prefetch = 0 : i64, scratch_operands = 0 : i64, tpu.core_type = #tpu.core_type<tc>, window_params = [{transform_indices = @transform_0, window_bounds = array<i64: 1, 8, 2>}, {transform_indices = @transform_1, window_bounds = array<i64: 1, 2, 128>}, {transform_indices = @transform_2, window_bounds = array<i64: 1, 8, 128>}]} {
    %c0 = arith.constant 0 : index
    %c0_0 = arith.constant 0 : index
    %c0_1 = arith.constant 0 : index
    %0 = vector.load %arg3[%c0, %c0_0, %c0_1] : memref<1x8x2xf32, #tpu.memory_space<vmem>>, vector<1x8x2xf32>
    %1 = vector.shape_cast %0 : vector<1x8x2xf32> to vector<8x2xf32>
    %c0_2 = arith.constant 0 : index
    %c0_3 = arith.constant 0 : index
    %c0_4 = arith.constant 0 : index
    %2 = vector.load %arg4[%c0_2, %c0_3, %c0_4] : memref<1x2x128xf32, #tpu.memory_space<vmem>>, vector<1x2x128xf32>
    %3 = vector.shape_cast %2 : vector<1x2x128xf32> to vector<2x128xf32>
    %cst = arith.constant dense<0.000000e+00> : vector<8x128xf32>
    %4 = tpu.matmul %1, %3, %cst {dimension_numbers = #tpu.dot_dimension_numbers<[1], [0], [0], [1], [0, 0, 1, 1], [], []>} : vector<8x2xf32>, vector<2x128xf32>, vector<8x128xf32> -> vector<8x128xf32>
    %c0_5 = arith.constant 0 : index
    %c0_6 = arith.constant 0 : index
    %c0_7 = arith.constant 0 : index
    %5 = vector.load %arg5[%c0_5, %c0_6, %c0_7] : memref<1x8x128xf32, #tpu.memory_space<vmem>>, vector<1x8x128xf32>
    %6 = vector.shape_cast %5 : vector<1x8x128xf32> to vector<8x128xf32>
    %7 = vector.shape_cast %4 : vector<8x128xf32> to vector<1x8x128xf32>
    tpu.vector_store %arg5[%c0_5, %c0_6, %c0_7], %7 {strides = array<i32>} : memref<1x8x128xf32, #tpu.memory_space<vmem>>, vector<1x8x128xf32>,
    return
  }
  func.func @transform_0(%arg0: i32, %arg1: i32, %arg2: i32) -> (i32, i32, i32) {
    %c0_i32 = arith.constant 0 : i32
    %c0_i32_0 = arith.constant 0 : i32
    %c0_i32_1 = arith.constant 0 : i32
    return %c0_i32, %arg2, %c0_i32_0 : i32, i32, i32
  }
  func.func @transform_1(%arg0: i32, %arg1: i32, %arg2: i32) -> (i32, i32, i32) {
    %c0_i32 = arith.constant 0 : i32
    %c0_i32_0 = arith.constant 0 : i32
    return %arg0, %c0_i32, %arg1 : i32, i32, i32
  }
  func.func @transform_2(%arg0: i32, %arg1: i32, %arg2: i32) -> (i32, i32, i32) {
    %c0_i32 = arith.constant 0 : i32
    return %arg0, %arg2, %arg1 : i32, i32, i32
  }
}

</mosaic_0001>

<bundles_post_ra>
// kernel: tpu_custom_call.1
= control target key start
LH: loop header
LB: loop body
LE: loop exit
PB: predicated region body
PF: predicated region fallthrough
CT: control target
= control target key end

     0   :  { %7 = vsyncpa [#allocation3], 0  ;;  %s241_s0 = inlined_call_operand.hbm [shape: f32[1,2,2], index: 0, kind: input, shape index: {}]   ;;  %s242_s1 = inlined_call_operand.vmem [shape: f32[1,2,2], index: 1, kind: input, shape index: {}]   ;;  %s243_s2 = inlined_call_operand.hbm [shape: f32[1,2,2], index: 2, kind: output, shape index: {}]  }
   0x1   :  { %8 = vsyncpa [#allocation4], 0 }
   0x2   :  { %13 = vsyncadd [#allocation3], 96  ;;  %s187_s9 = smov [#allocation2]   ;;  %s139_s13 = scalar_lea.hbm %s241_s0, 32 }
   0x3   :  { %s14_s10 = sshll.u32 %s187_s9, 4  ;;  %p140_p0 = scmp.ne.s32.totalorder %s241_s0, %s139_s13  ;;  %s15_s10 = int_to_ptr.vmem [resolvable:$true] %s14_s10 }
   0x4   :  { %p143_p1 = scmp.lt.u32.totalorder %s139_s13, %s241_s0 }
   0x6   :  { %p145_p2 = pnand %p143_p1, %p140_p0 }
   0x8   :  { %148 = shalt.err (!%p145_p2)
}
   0x9   :  { %s149_s18 = scalar_lea.vmem %s15_s10, 32  ;;  %s153_s19 = scalar_lea.vmem %s15_s10, 128 }
   0xa   :  { %p150_p3 = scmp.ne.s32.totalorder %s15_s10, %s149_s18  ;;  %p154_p4 = scmp.lt.s32.totalorder %s15_s10, %s15_s10 }
   0xb   :  { %p155_p5 = scmp.lt.s32.totalorder %s153_s19, %s149_s18 }
   0xd   :  { %p156_p6 = por %p155_p5, %p154_p4 }
   0xf   :  { %p157_p7 = pnand %p156_p6, %p150_p3 }
  0x11   :  { %160 = shalt.err (!%p157_p7)
}
  0x12   :  { %s188_s20 = smov 32   ;;  %s189_s21 = smov 2  }
  0x13   :  { %20 = dma.hbm_to_vmem [thread:$0]  %s241_s0, 32, %s15_s10, [#allocation3], %s188_s20, %s188_s20, %s189_s21  }
  0x14   :  { %183 = dma.done.wait [#allocation3], 128  }
  0x15   :  { %184 = vsyncadd [#allocation3], 4294967168  ;;  %v190_v0 = vmov 0.0   ;;  %vm191_vm0 = vmmov 0   ;;  %vm32_vm1 = vcmask 1041408   ;;  %vm28_vm2 = vcmask 15360  }
  0x16   :  { %128 = vmatprep.subr.mxu0 %v190_v0  ;;  %130 = vmatprep.mubr.msk.f32.mxu0 %vm191_vm0, %v190_v0  ;;  %v27_v1 = vld [vmem:[%s242_s1] sm:$0x3] }
  0x17   :  { %v26_v2 = vld [vmem:[#allocation2] sm:$0xff]  ;;  %129 = vmatpush3.msk.msra.mxu0 %vm32_vm1, %v27_v1 }
  0x18   :  { %131 = vmatmul.mubr.msk.f32.vlgmr.msra.gmra.mrb[0].mxu0 %vm28_vm2, %v26_v2 }
  0xeb   :  { %v102_v3 = vpop.f32.mrb[0].mxu0 }
  0xec   :  { %106 = vst [vmem:[#allocation5] sm:$0xff] %v102_v3  ;;  %v132_v4 = vpop.f32.mrb[1].mxu0 }
  0xed   :  { %111 = vsyncadd [#allocation4], 96  ;;  %s192_s0 = smov [#allocation5]  }
  0xee   :  { %s112_s26 = sshll.u32 %s192_s0, 4  ;;  %s113_s26 = int_to_ptr.vmem [resolvable:$true] %s112_s26 }
  0xef   :  { %s161_s27 = scalar_lea.vmem %s113_s26, 32  ;;  %s165_s28 = scalar_lea.vmem %s113_s26, 128 }
  0xf0   :  { %p162_p8 = scmp.ne.s32.totalorder %s113_s26, %s161_s27  ;;  %p166_p9 = scmp.lt.s32.totalorder %s113_s26, %s113_s26 }
  0xf1   :  { %p167_p10 = scmp.lt.s32.totalorder %s165_s28, %s161_s27 }
  0xf3   :  { %p168_p11 = por %p167_p10, %p166_p9 }
  0xf5   :  { %p169_p12 = pnand %p168_p11, %p162_p8 }
  0xf7   :  { %172 = shalt.err (!%p169_p12)
}
  0xf8   :  { %s173_s30 = scalar_lea.hbm %s243_s2, 32 }
  0xf9   :  { %p174_p13 = scmp.ne.s32.totalorder %s243_s2, %s173_s30  ;;  %p177_p0 = scmp.lt.u32.totalorder %s173_s30, %s243_s2 }
  0xfb   :  { %p179_p1 = pnand %p177_p0, %p174_p13 }
  0xfd   :  { %182 = shalt.err (!%p179_p1)
}
  0xfe   :  { %118 = dma.vmem_to_hbm [thread:$0]  %s113_s26, 32, %s243_s2, [#allocation4], %s188_s20, %s188_s20, %s189_s21  }
  0xff   :  { %185 = dma.done.wait [#allocation4], 128  }
 0x100   :  { %186 = vsyncadd [#allocation4], 4294967168 }
 0x101   :  { %122 = vsyncpa [#allocation3], 1 }
 0x102   :  { %123 = vsyncpa [#allocation4], 1 }

</bundles_post_ra>
